<compile_context>
chip_gen: v7x
topology: tpu7x:2x2x1
jax: 0.10.0
libtpu: 0.0.40
codegen_flags: <defaults>
</compile_context>

<pallas_src>
import functools

import jax
import jax.numpy as jnp
from jax.experimental import pallas as pl
from jax.experimental.pallas import tpu as pltpu


def nn3_kernel(x_ref, w1t_ref, b1_ref, w2t_ref, b2_ref, mean_ref, var_ref, *,
               min_variance):
    # First layer, computed transposed so BATCH lands on the lane axis:
    #   hT = W1^T @ x^T  -> (n_hidden, block_b).
    # x is consumed in its native (block_b, n_inputs) layout; the narrow
    # relayout needed to feed the MXU happens on-chip (idle XLU/MXU slack),
    # not as a separate HBM pass.
    h = jax.lax.dot_general(
        w1t_ref[...], x_ref[...],
        dimension_numbers=(((1,), (1,)), ((), ())),   # contract n_inputs dims
        preferred_element_type=jnp.float32)           # (n_hidden, block_b)
    h = jnp.maximum(h + b1_ref[...], 0.0)             # bias + ReLU, f32 throughout

    # Second layer: outT = W2^T @ hT + b2 -> (2, block_b).  h stays f32
    # (no gratuitous bf16 cast; MXU time is negligible either way).
    out = jnp.dot(w2t_ref[...], h, preferred_element_type=jnp.float32) + b2_ref[...]

    # One EUP sigmoid over the whole (2, block_b) tile, then the per-row affine
    # maps written to two lane-dense (1, block_b) outputs (unmasked stores).
    s = jax.nn.sigmoid(out)
    mean_ref[...] = 1.5 * s[0:1, :] - 0.75
    var_ref[...] = 0.1 * s[1:2, :] + min_variance


def _choose_block_b(b_padded, n_inputs, *, target_tile_bytes):
    """Largest lane tile (multiple of 128, dividing b_padded) whose x tile fits
    the per-step DMA byte budget; capped at b_padded//2 so the grid has >= 2
    'parallel' steps whenever possible (megacore sharding on v7x, pipelining)."""
    bytes_per_row = n_inputs * 4                      # f32 x
    budget = max(128, (target_tile_bytes // bytes_per_row) // 128 * 128)
    cap = b_padded if b_padded < 256 else b_padded // 2
    block = max(128, min(budget, cap) // 128 * 128)
    while b_padded % block != 0:                      # b_padded % 128 == 0 -> terminates
        block -= 128
    return block


def nn3_forward(x, w1, b1, w2, b2, *, min_variance=1e-5, block_b=None,
                target_tile_bytes=2 * 1024 * 1024):
    """x: (B, n_inputs) f32; w1: (n_inputs, n_hidden); b1: (1, n_hidden);
    w2: (n_hidden, 2); b2: (1, 2).  Returns (mean, variance), each (B,) f32.

    `target_tile_bytes` sizes the streamed x tile per grid step (~1-4 MiB keeps
    the ~0.35 µs per-step overhead amortized; bump towards 4 MiB on v7x)."""
    B, n_inputs = x.shape
    n_hidden = w1.shape[1]

    # Pad batch up to a multiple of 128 — never fall back to one giant block.
    B_pad = max(128, ((B + 127) // 128) * 128)
    if block_b is None:
        block_b = _choose_block_b(B_pad, n_inputs, target_tile_bytes=target_tile_bytes)
    assert B_pad % block_b == 0 and block_b % 128 == 0

    x_p = x.astype(jnp.float32)
    if B_pad != B:
        x_p = jnp.pad(x_p, ((0, B_pad - B), (0, 0)))

    # Tiny one-time relayouts of the VMEM-resident weights (a few KiB); the
    # batch-sized x goes in untouched -> no extra HBM pass over the batch.
    w1_t = jnp.asarray(w1, jnp.float32).T                       # (n_hidden, n_inputs)
    w2_t = jnp.asarray(w2, jnp.float32).T                       # (2, n_hidden)
    b1_c = jnp.reshape(jnp.asarray(b1, jnp.float32), (n_hidden, 1))
    b2_c = jnp.reshape(jnp.asarray(b2, jnp.float32), (2, 1))

    kernel = functools.partial(nn3_kernel, min_variance=float(min_variance))

    mean2d, var2d = pl.pallas_call(
        kernel,
        out_shape=(jax.ShapeDtypeStruct((1, B_pad), jnp.float32),
                   jax.ShapeDtypeStruct((1, B_pad), jnp.float32)),
        grid=(B_pad // block_b,),
        in_specs=[
            pl.BlockSpec((block_b, n_inputs), lambda i: (i, 0)),     # x tile (streamed)
            pl.BlockSpec((n_hidden, n_inputs), lambda i: (0, 0)),    # W1^T (resident)
            pl.BlockSpec((n_hidden, 1), lambda i: (0, 0)),           # b1
            pl.BlockSpec((2, n_hidden), lambda i: (0, 0)),           # W2^T
            pl.BlockSpec((2, 1), lambda i: (0, 0)),                  # b2
        ],
        out_specs=(pl.BlockSpec((1, block_b), lambda i: (0, i)),     # mean (lane-dense)
                   pl.BlockSpec((1, block_b), lambda i: (0, i))),    # variance
        compiler_params=pltpu.CompilerParams(
            dimension_semantics=("parallel",),
            vmem_limit_bytes=32 * 1024 * 1024),
    )(x_p, w1_t, b1_c, w2_t, b2_c)

    # (1, B_pad)[0, :B] is a squeeze (plus a slice only when padding was added);
    # for B already a multiple of 128 this is a free reshape, not a copy.
    return mean2d[0, :B], var2d[0, :B]


def init_params(key, n_inputs, n_hidden):
    """Deterministic PyTorch-Linear-style init: U(-1/sqrt(fan_in), 1/sqrt(fan_in))."""
    k1, k2, k3, k4 = jax.random.split(key, 4)
    bound1 = 1.0 / jnp.sqrt(n_inputs)
    bound2 = 1.0 / jnp.sqrt(n_hidden)
    w1 = jax.random.uniform(k1, (n_inputs, n_hidden), jnp.float32, -bound1, bound1)
    b1 = jax.random.uniform(k2, (1, n_hidden), jnp.float32, -bound1, bound1)
    w2 = jax.random.uniform(k3, (n_hidden, 2), jnp.float32, -bound2, bound2)
    b2 = jax.random.uniform(k4, (1, 2), jnp.float32, -bound2, bound2)
    return w1, b1, w2, b2


if __name__ == "__main__":
    key = jax.random.PRNGKey(0)
    kx, kp = jax.random.split(key)

    B, n_inputs, n_hidden = 8, 16, 32
    x = jax.random.normal(kx, (B, n_inputs), dtype=jnp.float32)
    w1, b1, w2, b2 = init_params(kp, n_inputs, n_hidden)

    def reference(xin):
        h = jnp.maximum(xin @ w1 + b1, 0.0)
        o = h @ w2 + b2
        mean = 1.5 * (jax.nn.sigmoid(o[:, 0]) - 0.5)
        variance = jax.nn.sigmoid(o[:, 1]) * 0.1 + 1e-5
        return mean, variance

    # Small batch (exercises the 128-padding path, grid = 1).
    mean, variance = nn3_forward(x, w1, b1, w2, b2, min_variance=1e-5)
    jax.block_until_ready((mean, variance))
    m_ref, v_ref = reference(x)
    assert mean.shape == (B,) and variance.shape == (B,)
    assert jnp.allclose(mean, m_ref, atol=2e-2), "mean mismatch"
    assert jnp.allclose(variance, v_ref, atol=5e-3), "variance mismatch"

    # Larger batch (exercises the multi-step pipelined / megacore-shardable path).
    B2 = 512
    x2 = jax.random.normal(jax.random.PRNGKey(1), (B2, n_inputs), dtype=jnp.float32)
    mean2, variance2 = nn3_forward(x2, w1, b1, w2, b2, min_variance=1e-5)
    jax.block_until_ready((mean2, variance2))
    m2_ref, v2_ref = reference(x2)
    assert mean2.shape == (B2,) and variance2.shape == (B2,)
    assert jnp.allclose(mean2, m2_ref, atol=2e-2), "mean mismatch (multi-block)"
    assert jnp.allclose(variance2, v2_ref, atol=5e-3), "variance mismatch (multi-block)"

    print("KERNEL_OK")
</pallas_src>

<mosaic_0001>
module attributes {stable_mosaic.version = 11 : i64} {
  func.func @nn3_kernel(%arg0: i32, %arg1: memref<128x16xf32, #tpu.memory_space<vmem>>, %arg2: memref<32x16xf32, #tpu.memory_space<vmem>>, %arg3: memref<32x1xf32, #tpu.memory_space<vmem>>, %arg4: memref<2x32xf32, #tpu.memory_space<vmem>>, %arg5: memref<2x1xf32, #tpu.memory_space<vmem>>, %arg6: memref<1x128xf32, #tpu.memory_space<vmem>>, %arg7: memref<1x128xf32, #tpu.memory_space<vmem>>) attributes {dimension_semantics = [#tpu.dimension_semantics<parallel>], iteration_bounds = array<i64: 1>, scalar_prefetch = 0 : i64, scratch_operands = 0 : i64, tpu.core_type = #tpu.core_type<tc>, window_params = [{transform_indices = @transform_0, window_bounds = array<i64: 128, 16>}, {pipeline_mode = #tpu.pipeline_mode<synchronous>, transform_indices = @transform_1, window_bounds = array<i64: 32, 16>}, {pipeline_mode = #tpu.pipeline_mode<synchronous>, transform_indices = @transform_2, window_bounds = array<i64: 32, 1>}, {pipeline_mode = #tpu.pipeline_mode<synchronous>, transform_indices = @transform_3, window_bounds = array<i64: 2, 32>}, {pipeline_mode = #tpu.pipeline_mode<synchronous>, transform_indices = @transform_4, window_bounds = array<i64: 2, 1>}, {transform_indices = @transform_5, window_bounds = array<i64: 1, 128>}, {transform_indices = @transform_6, window_bounds = array<i64: 1, 128>}]} {
    %c0 = arith.constant 0 : index
    %c0_0 = arith.constant 0 : index
    %0 = vector.load %arg2[%c0, %c0_0] : memref<32x16xf32, #tpu.memory_space<vmem>>, vector<32x16xf32>
    %c0_1 = arith.constant 0 : index
    %c0_2 = arith.constant 0 : index
    %1 = vector.load %arg1[%c0_1, %c0_2] : memref<128x16xf32, #tpu.memory_space<vmem>>, vector<128x16xf32>
    %cst = arith.constant dense<0.000000e+00> : vector<32x128xf32>
    %2 = tpu.matmul %0, %1, %cst {dimension_numbers = #tpu.dot_dimension_numbers<[1], [1], [0], [0], [0, 0, 1, 0], [], []>} : vector<32x16xf32>, vector<128x16xf32>, vector<32x128xf32> -> vector<32x128xf32>
    %c0_3 = arith.constant 0 : index
    %c0_4 = arith.constant 0 : index
    %3 = vector.load %arg3[%c0_3, %c0_4] : memref<32x1xf32, #tpu.memory_space<vmem>>, vector<32x1xf32>
    %4 = vector.broadcast %3 : vector<32x1xf32> to vector<32x128xf32>
    %5 = arith.addf %2, %4 : vector<32x128xf32>
    %cst_5 = arith.constant 0.000000e+00 : f32
    %6 = vector.broadcast %cst_5 : f32 to vector<32x128xf32>
    %7 = arith.maximumf %5, %6 : vector<32x128xf32>
    %c0_6 = arith.constant 0 : index
    %c0_7 = arith.constant 0 : index
    %8 = vector.load %arg4[%c0_6, %c0_7] : memref<2x32xf32, #tpu.memory_space<vmem>>, vector<2x32xf32>
    %cst_8 = arith.constant dense<0.000000e+00> : vector<2x128xf32>
    %9 = tpu.matmul %8, %7, %cst_8 {dimension_numbers = #tpu.dot_dimension_numbers<[1], [0], [0], [1], [0, 0, 1, 1], [], []>} : vector<2x32xf32>, vector<32x128xf32>, vector<2x128xf32> -> vector<2x128xf32>
    %c0_9 = arith.constant 0 : index
    %c0_10 = arith.constant 0 : index
    %10 = vector.load %arg5[%c0_9, %c0_10] : memref<2x1xf32, #tpu.memory_space<vmem>>, vector<2x1xf32>
    %11 = vector.broadcast %10 : vector<2x1xf32> to vector<2x128xf32>
    %12 = arith.addf %9, %11 : vector<2x128xf32>
    %13 = arith.negf %12 : vector<2x128xf32>
    %14 = math.exp %13 : vector<2x128xf32>
    %cst_11 = arith.constant 1.000000e+00 : f32
    %15 = vector.broadcast %cst_11 : f32 to vector<2x128xf32>
    %16 = arith.addf %15, %14 : vector<2x128xf32>
    %17 = arith.divf %15, %16 : vector<2x128xf32>
    %18 = vector.extract_strided_slice %17 {offsets = [0, 0], sizes = [1, 128], strides = [1, 1]} : vector<2x128xf32> to vector<1x128xf32>
    %cst_12 = arith.constant 1.500000e+00 : f32
    %19 = vector.broadcast %cst_12 : f32 to vector<1x128xf32>
    %20 = arith.mulf %19, %18 : vector<1x128xf32>
    %cst_13 = arith.constant 7.500000e-01 : f32
    %21 = vector.broadcast %cst_13 : f32 to vector<1x128xf32>
    %22 = arith.subf %20, %21 : vector<1x128xf32>
    %c0_14 = arith.constant 0 : index
    %c0_15 = arith.constant 0 : index
    %23 = vector.load %arg6[%c0_14, %c0_15] : memref<1x128xf32, #tpu.memory_space<vmem>>, vector<1x128xf32>
    tpu.vector_store %arg6[%c0_14, %c0_15], %22 {strides = array<i32>} : memref<1x128xf32, #tpu.memory_space<vmem>>, vector<1x128xf32>,
    %24 = vector.extract_strided_slice %17 {offsets = [1, 0], sizes = [1, 128], strides = [1, 1]} : vector<2x128xf32> to vector<1x128xf32>
    %cst_16 = arith.constant 1.000000e-01 : f32
    %25 = vector.broadcast %cst_16 : f32 to vector<1x128xf32>
    %26 = arith.mulf %25, %24 : vector<1x128xf32>
    %cst_17 = arith.constant 9.99999974E-6 : f32
    %27 = vector.broadcast %cst_17 : f32 to vector<1x128xf32>
    %28 = arith.addf %26, %27 : vector<1x128xf32>
    %c0_18 = arith.constant 0 : index
    %c0_19 = arith.constant 0 : index
    %29 = vector.load %arg7[%c0_18, %c0_19] : memref<1x128xf32, #tpu.memory_space<vmem>>, vector<1x128xf32>
    tpu.vector_store %arg7[%c0_18, %c0_19], %28 {strides = array<i32>} : memref<1x128xf32, #tpu.memory_space<vmem>>, vector<1x128xf32>,
    return
  }
  func.func @transform_0(%arg0: i32) -> (i32, i32) {
    %c0_i32 = arith.constant 0 : i32
    %c0_i32_0 = arith.constant 0 : i32
    return %arg0, %c0_i32 : i32, i32
  }
  func.func @transform_1(%arg0: i32) -> (i32, i32) {
    %c0_i32 = arith.constant 0 : i32
    %c0_i32_0 = arith.constant 0 : i32
    %c0_i32_1 = arith.constant 0 : i32
    return %c0_i32, %c0_i32_0 : i32, i32
  }
  func.func @transform_2(%arg0: i32) -> (i32, i32) {
    %c0_i32 = arith.constant 0 : i32
    %c0_i32_0 = arith.constant 0 : i32
    %c0_i32_1 = arith.constant 0 : i32
    return %c0_i32, %c0_i32_0 : i32, i32
  }
  func.func @transform_3(%arg0: i32) -> (i32, i32) {
    %c0_i32 = arith.constant 0 : i32
    %c0_i32_0 = arith.constant 0 : i32
    %c0_i32_1 = arith.constant 0 : i32
    return %c0_i32, %c0_i32_0 : i32, i32
  }
  func.func @transform_4(%arg0: i32) -> (i32, i32) {
    %c0_i32 = arith.constant 0 : i32
    %c0_i32_0 = arith.constant 0 : i32
    %c0_i32_1 = arith.constant 0 : i32
    return %c0_i32, %c0_i32_0 : i32, i32
  }
  func.func @transform_5(%arg0: i32) -> (i32, i32) {
    %c0_i32 = arith.constant 0 : i32
    %c0_i32_0 = arith.constant 0 : i32
    return %c0_i32, %arg0 : i32, i32
  }
  func.func @transform_6(%arg0: i32) -> (i32, i32) {
    %c0_i32 = arith.constant 0 : i32
    %c0_i32_0 = arith.constant 0 : i32
    return %c0_i32, %arg0 : i32, i32
  }
}

</mosaic_0001>

<bundles_post_ra>
// kernel: tpu_custom_call.1
= control target key start
LH: loop header
LB: loop body
LE: loop exit
PB: predicated region body
PF: predicated region fallthrough
CT: control target
= control target key end

     0   :  { %12 = vsyncpa [#allocation3], 0  ;;  %vm68_vm0 = vcmask 130048   ;;  %v550_v6 = vmov 0   ;;  %s743_s0 = inlined_call_operand.vmem [shape: f32[128,16], index: 0, kind: input, shape index: {}]   ;;  %s744_s1 = inlined_call_operand.vmem [shape: f32[32,16], index: 1, kind: input, shape index: {}]   ;;  %s745_s2 = inlined_call_operand.vmem [shape: f32[32,1], index: 2, kind: input, shape index: {}]   ;;  %s746_s3 = inlined_call_operand.vmem [shape: f32[2,32], index: 3, kind: input, shape index: {}]   ;;  %s747_s4 = inlined_call_operand.vmem [shape: f32[2,1], index: 4, kind: input, shape index: {}]   ;;  %s748_s5 = inlined_call_operand.hbm [shape: f32[1,128], index: 5, kind: output, shape index: {0}]   ;;  %s749_s6 = inlined_call_operand.hbm [shape: f32[1,128], index: 6, kind: output, shape index: {1}]  }
   0x1   :  { %v28_v0 = vld [vmem:[%s743_s0] sm:$0xff]  ;;  %v29_v1 = vld [vmem:[%s743_s0 + $0x8] sm:$0xff]  ;;  %v30_v2 = vld [vmem:[%s743_s0 + $0x10] sm:$0xff]  ;;  %496 = vset.pattern.permute.xlu0 %v550_v6  ;;  %497 = vset.pattern.permute.xlu1 %v550_v6 }
   0x2   :  { %v436_v3 = vpack.c.bf16 %v29_v1, %v28_v0  ;;  %vm602_vm1 = vmpackc.low %vm68_vm0, %vm68_vm0  ;;  %v31_v5 = vld [vmem:[%s743_s0 + $0x18] sm:$0xff]  ;;  %v24_v8 = vld [vmem:[%s744_s1] sm:$0xff] }
   0x3   :  { %v442_v7 = vpack.c.bf16 %v31_v5, %v30_v2  ;;  %v32_v9 = vld [vmem:[%s743_s0 + $0x20] sm:$0xff]  ;;  %v33_v10 = vld [vmem:[%s743_s0 + $0x28] sm:$0xff]  ;;  %419 = vmatprep.mubr.msk.f32.mxu0 %vm68_vm0, %v24_v8  ;;  %v46_v12 = vld [vmem:[%s745_s2 + $0x10] sm:$0xff] }
   0x4   :  { %438 = vmatprep.subr.msk.bf16.mxu0 %vm602_vm1, %v436_v3  ;;  %v44_v11 = vld [vmem:[%s745_s2] sm:$0xff]  ;;  %60 = vperm.xlu1 %497, %v46_v12  }
   0x5   :  { %441 = vmatpush3.bf16.xpose.msk.msra.mxu0 %vm602_vm1, %v436_v3  ;;  %50 = vperm.xlu0 %496, %v44_v11  }
   0x6   :  { %444 = vmatprep.subr.msk.bf16.mxu0 %vm602_vm1, %v442_v7 }
   0x7   :  { %13 = vsyncpa [#allocation5], 0  ;;  %v448_v13 = vpack.c.bf16 %v33_v10, %v32_v9  ;;  %v45_v14 = vld [vmem:[%s745_s2 + $0x8] sm:$0xff]  ;;  %v47_v15 = vld [vmem:[%s745_s2 + $0x18] sm:$0xff]  ;;  %v551_v35 = vmov 0.0|0.0   ;;  %vm552_vm2 = vmmov 0  }
   0x8   :  { %v219_v16 = vld [vmem:[%s747_s4] sm:$0x3]  ;;  %65 = vperm.xlu1 %497, %v47_v15   ;;  %v34_v17 = vld [vmem:[%s743_s0 + $0x30] sm:$0xff]  ;;  %v35_v18 = vld [vmem:[%s743_s0 + $0x38] sm:$0xff]  ;;  %484 = vmatprep.subr.bf16.mxu1 %v551_v35  ;;  %v553_v36 = vmov 0.0   ;;  %vm225_vm3 = vcmask 261120  }
   0x9   :  { %55 = vperm.xlu0 %496, %v45_v14   ;;  %v454_v19 = vpack.c.bf16 %v35_v18, %v34_v17  ;;  %v36_v20 = vld [vmem:[%s743_s0 + $0x40] sm:$0xff]  ;;  %v37_v21 = vld [vmem:[%s743_s0 + $0x48] sm:$0xff]  ;;  %v38_v23 = vld [vmem:[%s743_s0 + $0x50] sm:$0xff]  ;;  %433 = vmatprep.mubr.msk.f32.mxu1 %vm552_vm2, %v553_v36  ;;  %s554_s21 = smov [#allocation2]   ;;  %s555_s23 = smov [#allocation4]  }
   0xa   :  { %v460_v22 = vpack.c.bf16 %v37_v21, %v36_v20  ;;  %v39_v24 = vld [vmem:[%s743_s0 + $0x58] sm:$0xff]  ;;  %v40_v26 = vld [vmem:[%s743_s0 + $0x60] sm:$0xff]  ;;  %v41_v27 = vld [vmem:[%s743_s0 + $0x68] sm:$0xff]  ;;  %s317_s22 = sshll.u32 %s554_s21, 4  ;;  %s327_s24 = sshll.u32 %s555_s23, 4  ;;  %s318_s22 = int_to_ptr.vmem [resolvable:$true] %s317_s22  ;;  %s711_s24 = int_to_ptr.vmem [resolvable:$true] %s327_s24 }
   0xb   :  { %v466_v25 = vpack.c.bf16 %v39_v24, %v38_v23  ;;  %v472_v28 = vpack.c.bf16 %v41_v27, %v40_v26  ;;  %v42_v29 = vld [vmem:[%s743_s0 + $0x70] sm:$0xff]  ;;  %v43_v30 = vld [vmem:[%s743_s0 + $0x78] sm:$0xff]  ;;  %v25_v32 = vld [vmem:[%s744_s1 + $0x8] sm:$0xff]  ;;  %s506_s2 = scalar_lea.vmem %s318_s22, 32  ;;  %p507_p1 = scmp.lt.s32.totalorder %s318_s22, %s318_s22 }
   0xc   :  { %v478_v31 = vpack.c.bf16 %v43_v30, %v42_v29  ;;  %v26_v33 = vld [vmem:[%s744_s1 + $0x10] sm:$0xff]  ;;  %v27_v34 = vld [vmem:[%s744_s1 + $0x18] sm:$0xff]  ;;  %v218_v55 = vld [vmem:[%s746_s3] sm:$0x3]  ;;  %s502_s3 = scalar_lea.vmem %s318_s22, 16 }
   0xd   :  { %447 = vmatpush3.bf16.xpose.msk.msra.mxu0 %vm602_vm1, %v442_v7  ;;  %222 = vperm.xlu0 %496, %v219_v16   ;;  %p503_p0 = scmp.ne.s32.totalorder %s318_s22, %s502_s3  ;;  %p508_p2 = scmp.lt.s32.totalorder %s506_s2, %s502_s3 }
   0xe   :  { %450 = vmatprep.subr.msk.bf16.mxu0 %vm602_vm1, %v448_v13 }
   0xf   :  { %p509_p3 = por %p508_p2, %p507_p1 }
  0x11   :  { %p510_p4 = pnand %p509_p3, %p503_p0 }
  0x15   :  { %453 = vmatpush3.bf16.xpose.msk.msra.mxu0 %vm602_vm1, %v448_v13 }
  0x16   :  { %456 = vmatprep.subr.msk.bf16.mxu0 %vm602_vm1, %v454_v19 }
  0x1d   :  { %459 = vmatpush3.bf16.xpose.msk.msra.mxu0 %vm602_vm1, %v454_v19 }
  0x1e   :  { %462 = vmatprep.subr.msk.bf16.mxu0 %vm602_vm1, %v460_v22 }
  0x25   :  { %465 = vmatpush3.bf16.xpose.msk.msra.mxu0 %vm602_vm1, %v460_v22 }
  0x26   :  { %468 = vmatprep.subr.msk.bf16.mxu0 %vm602_vm1, %v466_v25 }
  0x2d   :  { %471 = vmatpush3.bf16.xpose.msk.msra.mxu0 %vm602_vm1, %v466_v25 }
  0x2e   :  { %474 = vmatprep.subr.msk.bf16.mxu0 %vm602_vm1, %v472_v28 }
  0x35   :  { %477 = vmatpush3.bf16.xpose.msk.msra.mxu0 %vm602_vm1, %v472_v28 }
  0x36   :  { %480 = vmatprep.subr.msk.bf16.mxu0 %vm602_vm1, %v478_v31 }
  0x3d   :  { %483 = vmatpush3.bf16.xpose.msk.msra.mxu0 %vm602_vm1, %v478_v31 }
  0x44   :  { %420 = vmatmul.mubr.msk.f32.vlgmr.msra.gmra.mrb[0].mxu0 %vm68_vm0, %v25_v32 }
  0x45   :  { %422 = vmatprep.mubr.msk.f32.mxu0 %vm68_vm0, %v26_v33 }
  0x48   :  { %423 = vmatmul.mubr.msk.f32.gmra.mrb[2].mxu0 %vm68_vm0, %v27_v34 }
  0x83   :  { %v61_v38 = vpop.permute.xlu1 %60 }
  0x84   :  { %v51_v37 = vpop.permute.xlu0 %50 }
  0x87   :  { %v66_v45 = vpop.permute.xlu1 %65 }
  0x88   :  { %v56_v39 = vpop.permute.xlu0 %55 }
  0x8c   :  { %v223_v56 = vpop.permute.xlu0 %222 }
 0x117   :  { %v421_v40 = vpop.f32.mrb[0].mxu0 }
 0x118   :  { %v201_v41 = vadd.f32 %v421_v40, %v56_v39  ;;  %v195_v42 = vpop.f32.mrb[1].mxu0 }
 0x119   :  { %v196_v43 = vadd.f32 %v195_v42, %v51_v37 }
 0x11a   :  { %v215_v44 = vmax.f32 %v201_v41, 0.0 }
 0x11b   :  { %v214_v46 = vmax.f32 %v196_v43, 0.0  ;;  %v424_v47 = vpop.f32.mrb[2].mxu0 }
 0x11c   :  { %v211_v48 = vadd.f32 %v424_v47, %v66_v45  ;;  %v205_v49 = vpop.f32.mrb[3].mxu0 }
 0x11d   :  { %v206_v50 = vadd.f32 %v205_v49, %v61_v38  ;;  %v485_v51 = vpack.c.bf16 %v215_v44, %v214_v46 }
 0x11e   :  { %v217_v52 = vmax.f32 %v211_v48, 0.0 }
 0x11f   :  { %v216_v53 = vmax.f32 %v206_v50, 0.0  ;;  %486 = vmatpush3.bf16.msra.mxu1 %v485_v51 }
 0x120   :  { %487 = vmatprep.subr.bf16.mxu1 %v551_v35 }
 0x121   :  { %v488_v54 = vpack.c.bf16 %v217_v52, %v216_v53 }
 0x123   :  { %489 = vmatpush3.bf16.msra.mxu1 %v488_v54 }
 0x126   :  { %434 = vmatmul.mubr.msk.f32.vlgmr.msra.gmra.mrb[0].mxu1 %vm225_vm3, %v218_v55 }
 0x1f9   :  { %v295_v57 = vpop.f32.mrb[0].mxu1 }
 0x1fa   :  { %v296_v58 = vadd.f32 %v295_v57, %v223_v56  ;;  %v435_v59 = vpop.f32.mrb[1].mxu1 }
 0x1fc   :  { %v360_v60 = vmul.f32 -1.442695, %v296_v58 }
 0x1fe   :  { %498 = vpow2.f32 %v360_v60 }
 0x208   :  { %v499_v61 = vpop.eup %498 }
 0x209   :  { %v302_v62 = vadd.f32 1.0, %v499_v61 }
 0x20b   :  { %500 = vrcp.f32 %v302_v62 }
 0x215   :  { %v501_v63 = vpop.eup %500 }
 0x216   :  { %v305_v0 = vmul.f32 1.5, %v501_v63  ;;  %v308_v1 = vmul.f32 0.1, %v501_v63 }
 0x218   :  { %v361_v2 = vadd.f32 -0.75, %v305_v0  ;;  %v309_v3 = vadd.f32 1e-05, %v308_v1 }
 0x21a   :  { %307 = vst [vmem:[#allocation2] sm:$0x1] %v361_v2  ;;  %310 = vst [vmem:[#allocation4 - $0x1] sm:$0x2] %v309_v3 }
 0x21b   :  { %513 = shalt.err (!%p510_p4)
}
 0x21c   :  { %s514_s26 = scalar_lea.hbm %s748_s5, 16 }
 0x21d   :  { %p515_p5 = scmp.ne.s32.totalorder %s748_s5, %s514_s26  ;;  %p518_p6 = scmp.lt.u32.totalorder %s514_s26, %s748_s5 }
 0x21f   :  { %p520_p7 = pnand %p518_p6, %p515_p5 }
 0x221   :  { %523 = shalt.err (!%p520_p7)
}
 0x222   :  { %320 = dma.vmem_to_hbm [thread:$0]  %s318_s22, 16, %s748_s5, [#allocation3]  }
 0x223   :  { %s524_s9 = scalar_lea.vmem %s711_s24, 16  ;;  %s528_s10 = scalar_lea.vmem %s711_s24, 32 }
 0x224   :  { %p525_p8 = scmp.ne.s32.totalorder %s711_s24, %s524_s9  ;;  %p529_p9 = scmp.lt.s32.totalorder %s711_s24, %s711_s24 }
 0x225   :  { %p530_p10 = scmp.lt.s32.totalorder %s528_s10, %s524_s9 }
 0x227   :  { %p531_p11 = por %p530_p10, %p529_p9 }
 0x229   :  { %p532_p12 = pnand %p531_p11, %p525_p8 }
 0x22b   :  { %535 = shalt.err (!%p532_p12)
}
 0x22c   :  { %s536_s13 = scalar_lea.hbm %s749_s6, 16 }
 0x22d   :  { %p537_p13 = scmp.ne.s32.totalorder %s749_s6, %s536_s13  ;;  %p540_p0 = scmp.lt.u32.totalorder %s536_s13, %s749_s6 }
 0x22f   :  { %p542_p1 = pnand %p540_p0, %p537_p13 }
 0x231   :  { %545 = shalt.err (!%p542_p1)
}
 0x232   :  { %330 = dma.vmem_to_hbm [thread:$0]  %s711_s24, 16, %s749_s6, [#allocation5]  }
 0x233   :  { %546 = dma.done.wait [#allocation3], 16  }
 0x234   :  { %547 = vsyncadd [#allocation3], 4294967280 }
 0x235   :  { %548 = dma.done.wait [#allocation5], 16  }
 0x236   :  { %549 = vsyncadd [#allocation5], 4294967280 }
 0x237   :  { %337 = vsyncpa [#allocation3], 1 }
 0x238   :  { %338 = vsyncpa [#allocation5], 1 }

</bundles_post_ra>
